<compile_context>
chip_gen: v6e
topology: v6e:2x2x1
jax: 0.10.0
libtpu: 0.0.40
codegen_flags: <defaults>
</compile_context>

<pallas_src>
import functools

import jax
import jax.numpy as jnp
import numpy as np
from jax import lax
from jax.experimental import pallas as pl
from jax.experimental.pallas import tpu as pltpu


# dot_general contracting the *last* dims of both operands: computes x @ W^T
# without materialising W^T on the host or transposing inside the kernel.
_DN_XW_T = (((1,), (1,)), ((), ()))

_MIB = 1024 * 1024


# ----------------------------------------------------------------------------
# Hardware-derived sizing (perf review: derive limits from get_tpu_info, not a
# hard-coded 32 MiB; v7x has only 64 MiB VMEM per TensorCore).
# ----------------------------------------------------------------------------
def _vmem_budget_bytes():
    cap = 128 * _MIB
    try:
        info = pltpu.get_tpu_info()
        cap = int(getattr(info, "vmem_capacity_bytes", cap))
    except Exception:  # pragma: no cover - conservative default off-TPU
        pass
    # ~half of physical VMEM: 64 MiB on v5e/v6e, 32 MiB on v7x.
    return int(min(96 * _MIB, max(32 * _MIB, cap // 2)))


def _round_up(x, m):
    return ((x + m - 1) // m) * m


def _row_tile(m_rows, hidden, budget):
    """Row tile for the GEMM kernels: big tiles amortize the ~0.35us/step grid
    overhead, but keep >=2 grid steps (v7x megacore) and fit the VMEM budget."""
    if m_rows <= 8:
        return m_rows
    tm = min(1024, m_rows, _round_up(pl.cdiv(m_rows, 2), 8))

    def fits(t):
        resident = 4 * (3 * hidden * hidden + 3 * hidden)   # stacked W + b (single-buffered)
        resident += 4 * t * hidden * 2                       # x block (double-buffered)
        resident += 4 * t * hidden * 3 * 2                   # q/k/v output blocks (double-buffered)
        return resident <= 0.8 * budget

    while tm > 8 and not fits(tm):
        tm = max(8, _round_up(tm // 2, 8))
    return tm


def _attn_batch_tile(batch, seq, head_dim, budget):
    """Largest divisor bt of B whose per-step attention working set fits VMEM
    (the (bt, L, L) score/exp/attn tensors are the hot spots)."""
    def step_bytes(bt):
        ll = bt * seq * seq
        return (2 * ll                         # int8 mask (double-buffered)
                + 4 * ll * 2                   # f32 attn output (double-buffered)
                + 4 * ll * 3                   # score / exp temporaries
                + 4 * bt * seq * head_dim * 8)  # q, k, v inputs + ctx output (double-buffered)

    for bt in range(batch, 0, -1):
        if batch % bt == 0 and step_bytes(bt) <= 0.7 * budget:
            return bt
    return 1


# ----------------------------------------------------------------------------
# Single-buffering (pl.Buffered(1)) for constant blocks, with a one-time probe
# so older jax versions gracefully fall back to default double-buffering.
# ----------------------------------------------------------------------------
_SINGLE_BUFFER_OK = None


def _probe_single_buffering():
    def _body(x_ref, c_ref, o_ref):
        o_ref[...] = x_ref[...] + c_ref[...]

    try:
        out = pl.pallas_call(
            _body,
            grid=(2,),
            out_shape=jax.ShapeDtypeStruct((16, 128), jnp.float32),
            in_specs=[pl.BlockSpec((8, 128), lambda i: (i, 0)),
                      pl.BlockSpec((8, 128), lambda i: (0, 0),
                                   pipeline_mode=pl.Buffered(1))],
            out_specs=pl.BlockSpec((8, 128), lambda i: (i, 0)),
        )(jnp.zeros((16, 128), jnp.float32), jnp.ones((8, 128), jnp.float32))
        out = jax.block_until_ready(out)
        return bool(jnp.allclose(out, 1.0))
    except Exception:  # noqa: BLE001 - any failure => default buffering
        return False


def _const_spec(block_shape, index_map):
    """BlockSpec for a block whose index never changes across the grid."""
    global _SINGLE_BUFFER_OK
    if _SINGLE_BUFFER_OK is None:
        _SINGLE_BUFFER_OK = _probe_single_buffering()
    if _SINGLE_BUFFER_OK:
        return pl.BlockSpec(block_shape, index_map, pipeline_mode=pl.Buffered(1))
    return pl.BlockSpec(block_shape, index_map)


# ----------------------------------------------------------------------------
# Kernels
# ----------------------------------------------------------------------------
def qkv_proj_kernel(x_ref, wqkv_ref, bqkv_ref, q_ref, k_ref, v_ref, *, scale, hidden):
    """Fused q/k/v = x @ [Wq;Wk;Wv]^T + b; q pre-scaled by 1/sqrt(head_dim).

    wqkv_ref is the stacked (3H, H) weight (one resident, single-buffered block,
    one HBM stream).  bqkv_ref is (3, 1, H).
    """
    x = x_ref[...]                                              # (TM, H)
    if hidden % 128 == 0:
        # One weight-stationary MXU pass; lane slices fall on vreg boundaries.
        y = lax.dot_general(x, wqkv_ref[...], _DN_XW_T,
                            preferred_element_type=jnp.float32)  # (TM, 3H)
        q_ref[...] = (y[:, :hidden] + bqkv_ref[0]) * scale
        k_ref[...] = y[:, hidden:2 * hidden] + bqkv_ref[1]
        v_ref[...] = y[:, 2 * hidden:] + bqkv_ref[2]
    else:
        # Small / lane-unaligned H (e.g. the unit test): slice the weight Ref on
        # its leading (sublane) axis instead of lane-slicing the result.
        q = lax.dot_general(x, wqkv_ref[:hidden, :], _DN_XW_T,
                            preferred_element_type=jnp.float32)
        k = lax.dot_general(x, wqkv_ref[hidden:2 * hidden, :], _DN_XW_T,
                            preferred_element_type=jnp.float32)
        v = lax.dot_general(x, wqkv_ref[2 * hidden:, :], _DN_XW_T,
                            preferred_element_type=jnp.float32)
        q_ref[...] = (q + bqkv_ref[0]) * scale
        k_ref[...] = k + bqkv_ref[1]
        v_ref[...] = v + bqkv_ref[2]


def attn_kernel(q_ref, k_ref, v_ref, m_ref, attn_ref, ctx_ref):
    """bt (batch*head) slices per grid step: softmax(mask(q k^T)) @ v."""
    q = q_ref[...]                                              # (bt, L, D), pre-scaled
    k = k_ref[...]                                              # (bt, L, D)
    v = v_ref[...]                                              # (bt, L, D)

    # s[b, l, n] = sum_d q[b, l, d] * k[b, n, d]  (batched, no transpose).
    # Note: contracts only head_dim, so the 256-deep v6e/v7x MXU is under-fed
    # when head_dim is tiny (test only); fine for production head_dim >= 64.
    s = lax.dot_general(q, k, (((2,), (2,)), ((0,), (0,))),
                        preferred_element_type=jnp.float32)
    # int8 mask compared directly -- no f32 (bt, L, L) temporary.
    # Matches torch masked_fill_(mask, -inf); fully-masked rows yield NaN,
    # exactly as in the PyTorch module.
    s = jnp.where(m_ref[...] != 0, -jnp.inf, s)

    # softmax over the last axis (torch.nn.Softmax(dim=-1)); exact reciprocal
    # keeps 1e-5 parity while doing L reciprocals instead of L*L divides.
    s_max = jnp.max(s, axis=-1, keepdims=True)
    e = jnp.exp(s - s_max)
    denom = jnp.sum(e, axis=-1, keepdims=True)
    a = e * pl.reciprocal(denom, approx=False)

    attn_ref[...] = a                                           # TODO(synk): bf16 for production
    ctx_ref[...] = lax.dot_general(a, v, (((2,), (1,)), ((0,), (0,))),
                                   preferred_element_type=jnp.float32)


def out_proj_kernel(ctx_ref, wo_ref, bo_ref, npm_ref, x_ref, gamma_ref, o_ref):
    """out = gamma * (non_pad_mask * (ctx @ Wo^T + bo)) + x  (x aliased to out)."""
    proj = lax.dot_general(ctx_ref[...], wo_ref[...], _DN_XW_T,
                           preferred_element_type=jnp.float32) + bo_ref[...]
    o_ref[...] = gamma_ref[0] * (npm_ref[...] * proj) + x_ref[...]


# ----------------------------------------------------------------------------
# Wrapper
# ----------------------------------------------------------------------------
def multi_attn_forward(params, x, attn_mask, non_pad_mask, head_num):
    B, L, H = x.shape
    head_dim = H // head_num
    scale = head_dim ** (-0.5)
    M = B * L

    budget = _vmem_budget_bytes()
    x2d = x.reshape(M, H)
    tm = _row_tile(M, H, budget)
    row_grid = (pl.cdiv(M, tm),)

    row_spec = pl.BlockSpec((tm, H), lambda i: (i, 0))
    wqkv_spec = _const_spec((3 * H, H), lambda i: (0, 0))
    bqkv_spec = _const_spec((3, 1, H), lambda i: (0, 0, 0))

    gemm_params = pltpu.CompilerParams(
        dimension_semantics=("parallel",), vmem_limit_bytes=budget)

    # ---- fused Q/K/V projection: one pass over x, one stacked weight ---------
    wqkv = jnp.concatenate([params["wq"], params["wk"], params["wv"]], axis=0)
    bqkv = jnp.stack([params["bq"], params["bk"], params["bv"]])[:, None, :]

    qf, kf, vf = pl.pallas_call(
        functools.partial(qkv_proj_kernel, scale=scale, hidden=H),
        grid=row_grid,
        out_shape=(jax.ShapeDtypeStruct((M, H), jnp.float32),) * 3,
        in_specs=[row_spec, wqkv_spec, bqkv_spec],
        out_specs=(row_spec,) * 3,
        compiler_params=gemm_params,
    )(x2d, wqkv, bqkv)

    # PyTorch: .view(B*head_num, L, head_dim) -- plain row-major reshape.
    BH = B * head_num
    q = qf.reshape(BH, L, head_dim)
    k = kf.reshape(BH, L, head_dim)
    v = vf.reshape(BH, L, head_dim)

    # attn_mask.repeat(head_num, 1, 1): slice bh uses attn_mask[bh % B]. With the
    # BH axis tiled as (head block h) x (batch tile jb), the mask block index is
    # just jb -- one int8 copy in HBM, re-fetched only when jb changes (head axis
    # iterates fastest).
    mask_i8 = attn_mask.astype(jnp.int8)
    bt = _attn_batch_tile(B, L, head_dim, budget)
    jgrid = B // bt

    qkv_spec = pl.BlockSpec((bt, L, head_dim), lambda jb, h: (h * jgrid + jb, 0, 0))
    score_spec = pl.BlockSpec((bt, L, L), lambda jb, h: (h * jgrid + jb, 0, 0))
    mask_spec = pl.BlockSpec((bt, L, L), lambda jb, h: (jb, 0, 0))

    attn, ctx = pl.pallas_call(
        attn_kernel,
        grid=(jgrid, head_num),
        out_shape=(
            jax.ShapeDtypeStruct((BH, L, L), jnp.float32),
            jax.ShapeDtypeStruct((BH, L, head_dim), jnp.float32),
        ),
        in_specs=[qkv_spec, qkv_spec, qkv_spec, mask_spec],
        out_specs=(score_spec, qkv_spec),
        compiler_params=pltpu.CompilerParams(
            dimension_semantics=("parallel", "parallel"), vmem_limit_bytes=budget),
    )(q, k, v, mask_i8)

    # ---- output projection + non_pad_mask + gamma residual (fused) ----------
    ctx2d = ctx.reshape(M, H)
    npm2d = non_pad_mask.reshape(M, 1).astype(jnp.float32)
    npm_spec = pl.BlockSpec((tm, 1), lambda i: (i, 0))
    wo_spec = _const_spec((H, H), lambda i: (0, 0))
    bo_spec = _const_spec((1, H), lambda i: (0, 0))
    gamma_spec = pl.BlockSpec(memory_space=pltpu.MemorySpace.SMEM)

    out2d = pl.pallas_call(
        out_proj_kernel,
        grid=row_grid,
        out_shape=jax.ShapeDtypeStruct((M, H), jnp.float32),
        in_specs=[row_spec, wo_spec, bo_spec, npm_spec, row_spec, gamma_spec],
        out_specs=row_spec,
        # x rows are read before the same rows are written -> alias x into out.
        input_output_aliases={4: 0},
        compiler_params=gemm_params,
    )(ctx2d, params["wo"], params["bo"].reshape(1, H), npm2d, x2d,
      params["gamma"])

    return out2d.reshape(B, L, H), attn


# ----------------------------------------------------------------------------
# Pure-JAX reference (mirrors the PyTorch forward exactly)
# ----------------------------------------------------------------------------
def multi_attn_reference(params, x, attn_mask, non_pad_mask, head_num):
    B, L, H = x.shape
    head_dim = H // head_num
    scale = head_dim ** (-0.5)

    qf = x @ params["wq"].T + params["bq"]
    kf = x @ params["wk"].T + params["bk"]
    vf = x @ params["wv"].T + params["bv"]

    BH = B * head_num
    q = qf.reshape(BH, L, head_dim)
    k = kf.reshape(BH, L, head_dim)
    v = vf.reshape(BH, L, head_dim)

    mask_rep = jnp.tile(attn_mask, (head_num, 1, 1))
    attn = scale * jnp.einsum("bld,bmd->blm", q, k)
    attn = jnp.where(mask_rep, -jnp.inf, attn)
    attn = jax.nn.softmax(attn, axis=-1)

    out = jnp.einsum("blm,bmd->bld", attn, v).reshape(B, L, H)
    out = out @ params["wo"].T + params["bo"]
    out = non_pad_mask * out
    out = params["gamma"][0] * out + x
    return out, attn


# ----------------------------------------------------------------------------
# Deterministic parameter init (shapes from MultiAttn.__init__)
# ----------------------------------------------------------------------------
def init_params(key, in_dim):
    ks = jax.random.split(key, 8)

    def lin(kw, kb, out_f, in_f):
        bound = 1.0 / np.sqrt(in_f)
        w = jax.random.uniform(kw, (out_f, in_f), jnp.float32, -bound, bound)
        b = jax.random.uniform(kb, (out_f,), jnp.float32, -bound, bound)
        return w, b

    wq, bq = lin(ks[0], ks[1], in_dim, in_dim)
    wk, bk = lin(ks[2], ks[3], in_dim, in_dim)
    wv, bv = lin(ks[4], ks[5], in_dim, in_dim)
    wo, bo = lin(ks[6], ks[7], in_dim, in_dim)
    gamma = jnp.zeros((1,), jnp.float32)  # nn.Parameter(FloatTensor([0]))
    return dict(wq=wq, bq=bq, wk=wk, bk=bk, wv=wv, bv=bv, wo=wo, bo=bo,
                gamma=gamma)


if __name__ == "__main__":
    B, L, H, head_num = 2, 8, 32, 8

    key = jax.random.PRNGKey(0)
    k_param, k_x, k_mask, k_npm = jax.random.split(key, 4)

    params = init_params(k_param, H)
    # gamma is initialized to 0 in the module; use a nonzero value in the test
    # so the non_pad_mask / output-projection / residual path is exercised.
    params["gamma"] = jnp.array([0.37], jnp.float32)

    x = jax.random.normal(k_x, (B, L, H), jnp.float32)

    # attn_mask: bool (B, L, L), True = masked; keep column 0 unmasked so no
    # softmax row is entirely -inf.
    attn_mask = jax.random.uniform(k_mask, (B, L, L)) < 0.3
    attn_mask = attn_mask.at[:, :, 0].set(False)

    # non_pad_mask: (B, L, 1) of 0/1
    non_pad_mask = (jax.random.uniform(k_npm, (B, L, 1)) < 0.8).astype(jnp.float32)

    out, attn = multi_attn_forward(params, x, attn_mask, non_pad_mask, head_num)
    out = jax.block_until_ready(out)
    attn = jax.block_until_ready(attn)

    out_ref, attn_ref = multi_attn_reference(params, x, attn_mask,
                                             non_pad_mask, head_num)
    np.testing.assert_allclose(np.asarray(out), np.asarray(out_ref),
                               rtol=1e-5, atol=1e-5)
    np.testing.assert_allclose(np.asarray(attn), np.asarray(attn_ref),
                               rtol=1e-5, atol=1e-5)

    print("KERNEL_OK")
</pallas_src>

<mosaic_0001>
module attributes {stable_mosaic.version = 11 : i64} {
  func.func @_body(%arg0: i32, %arg1: memref<8x128xf32, #tpu.memory_space<vmem>>, %arg2: memref<8x128xf32, #tpu.memory_space<vmem>>, %arg3: memref<8x128xf32, #tpu.memory_space<vmem>>) attributes {dimension_semantics = [#tpu.dimension_semantics<arbitrary>], iteration_bounds = array<i64: 2>, scalar_prefetch = 0 : i64, scratch_operands = 0 : i64, tpu.core_type = #tpu.core_type<tc>, window_params = [{transform_indices = @transform_0, window_bounds = array<i64: 8, 128>}, {pipeline_mode = #tpu.pipeline_mode<synchronous>, transform_indices = @transform_1, window_bounds = array<i64: 8, 128>}, {transform_indices = @transform_2, window_bounds = array<i64: 8, 128>}]} {
    %c0 = arith.constant 0 : index
    %c0_0 = arith.constant 0 : index
    %0 = vector.load %arg1[%c0, %c0_0] : memref<8x128xf32, #tpu.memory_space<vmem>>, vector<8x128xf32>
    %c0_1 = arith.constant 0 : index
    %c0_2 = arith.constant 0 : index
    %1 = vector.load %arg2[%c0_1, %c0_2] : memref<8x128xf32, #tpu.memory_space<vmem>>, vector<8x128xf32>
    %2 = arith.addf %0, %1 : vector<8x128xf32>
    %c0_3 = arith.constant 0 : index
    %c0_4 = arith.constant 0 : index
    %3 = vector.load %arg3[%c0_3, %c0_4] : memref<8x128xf32, #tpu.memory_space<vmem>>, vector<8x128xf32>
    tpu.vector_store %arg3[%c0_3, %c0_4], %2 {strides = array<i32>} : memref<8x128xf32, #tpu.memory_space<vmem>>, vector<8x128xf32>,
    return
  }
  func.func @transform_0(%arg0: i32) -> (i32, i32) {
    %c0_i32 = arith.constant 0 : i32
    %c0_i32_0 = arith.constant 0 : i32
    return %arg0, %c0_i32 : i32, i32
  }
  func.func @transform_1(%arg0: i32) -> (i32, i32) {
    %c0_i32 = arith.constant 0 : i32
    %c0_i32_0 = arith.constant 0 : i32
    %c0_i32_1 = arith.constant 0 : i32
    return %c0_i32, %c0_i32_0 : i32, i32
  }
  func.func @transform_2(%arg0: i32) -> (i32, i32) {
    %c0_i32 = arith.constant 0 : i32
    %c0_i32_0 = arith.constant 0 : i32
    return %arg0, %c0_i32 : i32, i32
  }
}

module attributes {stable_mosaic.version = 11 : i64} {
  func.func @qkv_proj_kernel(%arg0: i32, %arg1: memref<8x32xf32, #tpu.memory_space<vmem>>, %arg2: memref<96x32xf32, #tpu.memory_space<vmem>>, %arg3: memref<3x1x32xf32, #tpu.memory_space<vmem>>, %arg4: memref<8x32xf32, #tpu.memory_space<vmem>>, %arg5: memref<8x32xf32, #tpu.memory_space<vmem>>, %arg6: memref<8x32xf32, #tpu.memory_space<vmem>>) attributes {dimension_semantics = [#tpu.dimension_semantics<parallel>], iteration_bounds = array<i64: 2>, scalar_prefetch = 0 : i64, scratch_operands = 0 : i64, tpu.core_type = #tpu.core_type<tc>, window_params = [{transform_indices = @transform_0, window_bounds = array<i64: 8, 32>}, {pipeline_mode = #tpu.pipeline_mode<synchronous>, transform_indices = @transform_1, window_bounds = array<i64: 96, 32>}, {pipeline_mode = #tpu.pipeline_mode<synchronous>, transform_indices = @transform_2, window_bounds = array<i64: 3, 1, 32>}, {transform_indices = @transform_3, window_bounds = array<i64: 8, 32>}, {transform_indices = @transform_4, window_bounds = array<i64: 8, 32>}, {transform_indices = @transform_5, window_bounds = array<i64: 8, 32>}]} {
    %c0 = arith.constant 0 : index
    %c0_0 = arith.constant 0 : index
    %0 = vector.load %arg1[%c0, %c0_0] : memref<8x32xf32, #tpu.memory_space<vmem>>, vector<8x32xf32>
    %c0_1 = arith.constant 0 : index
    %c0_2 = arith.constant 0 : index
    %1 = vector.load %arg2[%c0_1, %c0_2] : memref<96x32xf32, #tpu.memory_space<vmem>>, vector<32x32xf32>
    %cst = arith.constant dense<0.000000e+00> : vector<8x32xf32>
    %2 = tpu.matmul %0, %1, %cst {dimension_numbers = #tpu.dot_dimension_numbers<[1], [1], [0], [0], [0, 0, 1, 0], [], []>} : vector<8x32xf32>, vector<32x32xf32>, vector<8x32xf32> -> vector<8x32xf32>
    %c32 = arith.constant 32 : index
    %c0_3 = arith.constant 0 : index
    %3 = vector.load %arg2[%c32, %c0_3] : memref<96x32xf32, #tpu.memory_space<vmem>>, vector<32x32xf32>
    %cst_4 = arith.constant dense<0.000000e+00> : vector<8x32xf32>
    %4 = tpu.matmul %0, %3, %cst_4 {dimension_numbers = #tpu.dot_dimension_numbers<[1], [1], [0], [0], [0, 0, 1, 0], [], []>} : vector<8x32xf32>, vector<32x32xf32>, vector<8x32xf32> -> vector<8x32xf32>
    %c64 = arith.constant 64 : index
    %c0_5 = arith.constant 0 : index
    %5 = vector.load %arg2[%c64, %c0_5] : memref<96x32xf32, #tpu.memory_space<vmem>>, vector<32x32xf32>
    %cst_6 = arith.constant dense<0.000000e+00> : vector<8x32xf32>
    %6 = tpu.matmul %0, %5, %cst_6 {dimension_numbers = #tpu.dot_dimension_numbers<[1], [1], [0], [0], [0, 0, 1, 0], [], []>} : vector<8x32xf32>, vector<32x32xf32>, vector<8x32xf32> -> vector<8x32xf32>
    %c0_7 = arith.constant 0 : index
    %c0_8 = arith.constant 0 : index
    %c0_9 = arith.constant 0 : index
    %7 = vector.load %arg3[%c0_7, %c0_8, %c0_9] : memref<3x1x32xf32, #tpu.memory_space<vmem>>, vector<1x1x32xf32>
    %8 = vector.shape_cast %7 : vector<1x1x32xf32> to vector<1x32xf32>
    %9 = vector.broadcast %8 : vector<1x32xf32> to vector<8x32xf32>
    %10 = arith.addf %2, %9 : vector<8x32xf32>
    %cst_10 = arith.constant 5.000000e-01 : f32
    %11 = vector.broadcast %cst_10 : f32 to vector<8x32xf32>
    %12 = arith.mulf %10, %11 : vector<8x32xf32>
    %c0_11 = arith.constant 0 : index
    %c0_12 = arith.constant 0 : index
    %13 = vector.load %arg4[%c0_11, %c0_12] : memref<8x32xf32, #tpu.memory_space<vmem>>, vector<8x32xf32>
    tpu.vector_store %arg4[%c0_11, %c0_12], %12 {strides = array<i32>} : memref<8x32xf32, #tpu.memory_space<vmem>>, vector<8x32xf32>,
    %c1 = arith.constant 1 : index
    %c0_13 = arith.constant 0 : index
    %c0_14 = arith.constant 0 : index
    %14 = vector.load %arg3[%c1, %c0_13, %c0_14] : memref<3x1x32xf32, #tpu.memory_space<vmem>>, vector<1x1x32xf32>
    %15 = vector.shape_cast %14 : vector<1x1x32xf32> to vector<1x32xf32>
    %16 = vector.broadcast %15 : vector<1x32xf32> to vector<8x32xf32>
    %17 = arith.addf %4, %16 : vector<8x32xf32>
    %c0_15 = arith.constant 0 : index
    %c0_16 = arith.constant 0 : index
    %18 = vector.load %arg5[%c0_15, %c0_16] : memref<8x32xf32, #tpu.memory_space<vmem>>, vector<8x32xf32>
    tpu.vector_store %arg5[%c0_15, %c0_16], %17 {strides = array<i32>} : memref<8x32xf32, #tpu.memory_space<vmem>>, vector<8x32xf32>,
    %c2 = arith.constant 2 : index
    %c0_17 = arith.constant 0 : index
    %c0_18 = arith.constant 0 : index
    %19 = vector.load %arg3[%c2, %c0_17, %c0_18] : memref<3x1x32xf32, #tpu.memory_space<vmem>>, vector<1x1x32xf32>
    %20 = vector.shape_cast %19 : vector<1x1x32xf32> to vector<1x32xf32>
    %21 = vector.broadcast %20 : vector<1x32xf32> to vector<8x32xf32>
    %22 = arith.addf %6, %21 : vector<8x32xf32>
    %c0_19 = arith.constant 0 : index
    %c0_20 = arith.constant 0 : index
    %23 = vector.load %arg6[%c0_19, %c0_20] : memref<8x32xf32, #tpu.memory_space<vmem>>, vector<8x32xf32>
    tpu.vector_store %arg6[%c0_19, %c0_20], %22 {strides = array<i32>} : memref<8x32xf32, #tpu.memory_space<vmem>>, vector<8x32xf32>,
    return
  }
  func.func @transform_0(%arg0: i32) -> (i32, i32) {
    %c0_i32 = arith.constant 0 : i32
    %c0_i32_0 = arith.constant 0 : i32
    return %arg0, %c0_i32 : i32, i32
  }
  func.func @transform_1(%arg0: i32) -> (i32, i32) {
    %c0_i32 = arith.constant 0 : i32
    %c0_i32_0 = arith.constant 0 : i32
    %c0_i32_1 = arith.constant 0 : i32
    return %c0_i32, %c0_i32_0 : i32, i32
  }
  func.func @transform_2(%arg0: i32) -> (i32, i32, i32) {
    %c0_i32 = arith.constant 0 : i32
    %c0_i32_0 = arith.constant 0 : i32
    %c0_i32_1 = arith.constant 0 : i32
    %c0_i32_2 = arith.constant 0 : i32
    return %c0_i32, %c0_i32_0, %c0_i32_1 : i32, i32, i32
  }
  func.func @transform_3(%arg0: i32) -> (i32, i32) {
    %c0_i32 = arith.constant 0 : i32
    %c0_i32_0 = arith.constant 0 : i32
    return %arg0, %c0_i32 : i32, i32
  }
  func.func @transform_4(%arg0: i32) -> (i32, i32) {
    %c0_i32 = arith.constant 0 : i32
    %c0_i32_0 = arith.constant 0 : i32
    return %arg0, %c0_i32 : i32, i32
  }
  func.func @transform_5(%arg0: i32) -> (i32, i32) {
    %c0_i32 = arith.constant 0 : i32
    %c0_i32_0 = arith.constant 0 : i32
    return %arg0, %c0_i32 : i32, i32
  }
}

</mosaic_0001>

<bundles_post_ra>
// kernel: tpu_custom_call.1
= control target key start
LH: loop header
LB: loop body
LE: loop exit
PB: predicated region body
PF: predicated region fallthrough
CT: control target
= control target key end

     0   :  { %7 = vsyncpa [#allocation3], 0  ;;  %s649_s0 = inlined_call_operand.hbm [shape: f32[16,128], index: 0, kind: input, shape index: {}]   ;;  %s650_s1 = inlined_call_operand.hbm [shape: f32[8,128], index: 1, kind: input, shape index: {}]   ;;  %s651_s2 = inlined_call_operand.hbm [shape: f32[16,128], index: 2, kind: output, shape index: {}]  }
   0x1   :  { %9 = vsyncpa [#allocation3 + $0x1], 0 }
   0x2   :  { %10 = vsyncpa [#allocation6], 0 }
   0x3   :  { %11 = vsyncpa [#allocation4], 0 }
   0x4   :  { %13 = vsyncpa [#allocation4 + $0x1], 0  ;;  %s483_s9 = smov 0   ;;  %s485_s10 = smov 0  }
   0x5   :  { %s487_s11 = smov 0   ;;  %s489_s12 = smov 0  }
   0x6 LB: > { %s504_s13 = sadd.s32 4294967295, %s463_s12   ;;  %s270_s14 = sadd.s32 4294967294, %s463_s12   ;;  %s463_s12 = sphi %s489_s12, %s674_s12   ;;  %s459_s11 = sphi %s487_s11, %s673_s11   ;;  %s455_s10 = sphi %s485_s10, %s672_s10   ;;  %s451_s9 = sphi %s483_s9, %s671_s9  }
   0x7   : > { %p39_p0 = scmp.ne.s32.totalorder %s455_s10, %s451_s9  ;;  %p652_p1 = scmp.eq.s32.totalorder %s504_s13, 0 }
   0x8   : > { %p90_p3 = scmp.eq.s32.totalorder %s270_s14, 1  ;;  %p271_p5 = scmp.ge.s32.totalorder %s463_s12, 1 }
   0x9   : > { %p513_p4 = por %p652_p1, %p39_p0  ;;  %p97_p7 = scmp.lt.s32.totalorder %s463_s12, 3 }
   0xa   : > { %p518_p6 = por %p90_p3, %p39_p0  ;;  %s465_s18 = smov [#allocation5]  }
   0xb   : > { %s656_s15 = scalar_select %p513_p4, 1, 0 }
   0xc   : > { %s657_s16 = scalar_select %p518_p6, 1, 0 }
   0xd   : > { %p523_p8 = pnand %p271_p5, %p97_p7  ;;  %s110_s19 = sshll.u32 %s465_s18, 4  ;;  %s111_s19 = int_to_ptr.vmem [resolvable:$true] %s110_s19 }
   0xe   : > { %s531_s20 = sadd.s32 1, %s463_s12   ;;  %s26_s24 = sadd.s32 1, %s459_s11 }
   0xf   : > { %s658_s17 = scalar_select %p523_p8, 1, 0 }
  0x10   : > { %p292_p10 = pneg %p523_p8  ;;  %s23_s22 = ssub.s32 %s463_s12, %s531_s20 }
  0x11   : > { %p541_p12 = scmp.eq.s32.totalorder %s23_s22, 0  ;;  %p33_p13 = scmp.ne.s32.totalorder %s459_s11, %s455_s10 }
  0x12   : > { %p535_p11 = pnand %p292_p10, %p652_p1  ;;  %s352_s25 = scalar_lea.vmem %s111_s19, 128 }
  0x13   : > { %p353_p3 = scmp.ne.s32.totalorder %s111_s19, %s352_s25  ;;  %p360_p9 = scmp.lt.s32.totalorder %s111_s19, %s111_s19 }
  0x14   : > { %p343_p0 = pneg %p535_p11  ;;  %p361_p2 = scmp.lt.s32.totalorder %s352_s25, %s352_s25 }
  0x16   : > { %p355_p5 = pnand %p353_p3, %p343_p0  ;;  %p362_p10 = por %p361_p2, %p360_p9 }
  0x18   : > { %p356_p7 = pneg %p355_p5 }
  0x1a   : > { %p363_p1 = pnand %p362_p10, %p356_p7 }
  0x1c   : > { %366 = shalt.err (!%p363_p1)
}
  0x1d   : > { %295 = dma.hbm_to_vmem [thread:$0]  (!%p535_p11), %s650_s1, 128, %s111_s19, [#allocation6]  }
  0x1e   : > { %s558_s28 = scalar_select %p541_p12, %s459_s11, %s26_s24  }
  0x1f   : > { %p34_p1 = scmp.eq.s32.totalorder %s463_s12, 0  ;;  %p661_p2 = scmp.eq.s32.totalorder %s504_s13, 1 }
  0x20   : > { %p305_p0 = scmp.lt.s32.totalorder %s463_s12, 2  ;;  %s121_s30 = sand.u32 1, %s459_s11  }
  0x21   : > { %p566_p9 = por %p661_p2, %p33_p13  ;;  %p35_p3 = por %p34_p1, %p33_p13 }
  0x22   : > { %s274_s3 = sshll.u32 %s121_s30, 3  ;;  %s275_s4 = sshll.u32 %s463_s12, 7 }
  0x23   : > { %s662_s29 = scalar_select %p566_p9, 1, 0 }
  0x24   : > { %s579_s7 = scalar_lea.hbm %s649_s0, %s275_s4  ;;  %s125_s8 = scalar_lea.vmem [#allocation2], %s274_s3 }
  0x25   : > { %s132_s14 = sshll.u32 %s125_s8, 4  ;;  %p581_p11 = pnand %p305_p0, %p35_p3  ;;  %s133_s14 = int_to_ptr.vmem [resolvable:$true] %s132_s14 }
  0x26   : > { %s122_s19 = scalar_lea.sflag [#allocation3], %s121_s30  ;;  %s367_s21 = scalar_lea.hbm %s579_s7, 128 }
  0x27   : > { %p368_p12 = scmp.ne.s32.totalorder %s579_s7, %s367_s21  ;;  %p369_p13 = pneg %p581_p11 }
  0x28   : > { %s372_s24 = scalar_lea.hbm %s649_s0, 256  ;;  %p373_p10 = scmp.lt.s32.totalorder %s579_s7, %s649_s0 }
  0x29   : > { %p370_p5 = pnand %p369_p13, %p368_p12  ;;  %p374_p1 = scmp.lt.s32.totalorder %s372_s24, %s367_s21 }
  0x2b   : > { %p371_p7 = pneg %p370_p5  ;;  %p375_p2 = por %p374_p1, %p373_p10 }
  0x2d   : > { %p376_p0 = pnand %p375_p2, %p371_p7 }
  0x2f   : > { %379 = shalt.err (!%p376_p0)
}
  0x30   : > { %s380_s27 = scalar_lea.vmem %s133_s14, 128  ;;  %s466_s30 = smov [#allocation2]  }
  0x31   : > { %p381_p3 = scmp.ne.s32.totalorder %s133_s14, %s380_s27  ;;  %s385_s3 = sshll.u32 %s466_s30, 4  ;;  %s386_s3 = int_to_ptr.vmem [resolvable:$false] %s385_s3 }
  0x32   : > { %s387_s4 = scalar_lea.vmem %s386_s3, 256  ;;  %p388_p12 = scmp.lt.s32.totalorder %s133_s14, %s386_s3 }
  0x33   : > { %p383_p6 = pnand %p381_p3, %p369_p13  ;;  %p389_p5 = scmp.lt.s32.totalorder %s387_s4, %s380_s27 }
  0x35   : > { %p384_p9 = pneg %p383_p6  ;;  %p390_p4 = por %p389_p5, %p388_p12 }
  0x37   : > { %p391_p8 = pnand %p390_p4, %p384_p9 }
  0x39   : > { %394 = shalt.err (!%p391_p8)
}
  0x3a   : > { %299 = dma.hbm_to_vmem [thread:$0]  (!%p581_p11), %s579_s7, 128, %s133_s14, %s122_s19  }
  0x3b   : > { %p664_p7 = scmp.ne.s32.totalorder %s658_s17, 0 }
  0x3c   : > { %s602_s5 = sand.u32 (!%p664_p7), 1, %s455_s10   ;;  %p665_p6 = scmp.ne.s32.totalorder (!%p664_p7), %s656_s15, 0 }
  0x3d   : > { %141 = sbr.rel (%p664_p7) target bundleno = 95 (0x5f), region = 28  ;;  %s277_s6 = sshll.u32 (!%p664_p7), %s602_s5, 3 }
  0x3e   : > { %s144_s8 = scalar_lea.sflag (!%p664_p7), [#allocation3], %s602_s5  ;;  %s147_s21 = scalar_lea.vmem (!%p664_p7), [#allocation2], %s277_s6 }
  0x42   : > { %438 = dma.done.wait (%p665_p6), %s144_s8, 128  }
  0x43   : > { %440 = vsyncadd (%p665_p6), %s144_s8, 4294967168  ;;  %p666_p4 = scmp.eq.s32.totalorder %s504_s13, 0 }
  0x45   : > { %442 = dma.done.wait (%p666_p4), [#allocation6], 128   ;;  %p667_p8 = pmov %p666_p4 }
  0x46   : > { %s171_s17 = scalar_lea.vmem [#allocation7], %s277_s6  ;;  %s281_s14 = sshll.u32 %s504_s13, 7  ;;  %v172_v0 = vld [vmem:[%s147_s21] sm:$0xff]  ;;  %v173_v1 = vld [vmem:[#allocation5] sm:$0xff] }
  0x47   : > { %444 = vsyncadd (%p667_p8), [#allocation6], 4294967168  ;;  %s190_s7 = sshll.u32 %s171_s17, 4  ;;  %v174_v2 = vadd.f32 %v173_v1, %v172_v0  ;;  %s188_s15 = scalar_lea.hbm %s651_s2, %s281_s14  ;;  %s191_s7 = int_to_ptr.vmem [resolvable:$true] %s190_s7 }
  0x48   : > { %s177_s22 = scalar_lea.sflag [#allocation4], %s602_s5  ;;  %s395_s23 = scalar_lea.vmem %s191_s7, 128 }
  0x49   : > { %175 = vst [vmem:[%s171_s17] sm:$0xff] %v174_v2  ;;  %p396_p9 = scmp.ne.s32.totalorder %s191_s7, %s395_s23  ;;  %p668_p11 = scmp.ne.s32.totalorder %s662_s29, 0 }
  0x4a   : > { %s467_s24 = smov [#allocation7]  }
  0x4b   : > { %p397_p13 = pnand %p396_p9, %p668_p11  ;;  %s399_s25 = sshll.u32 %s467_s24, 4  ;;  %s400_s25 = int_to_ptr.vmem [resolvable:$false] %s399_s25 }
  0x4c   : > { %s401_s26 = scalar_lea.vmem %s400_s25, 256  ;;  %p402_p1 = scmp.lt.s32.totalorder %s191_s7, %s400_s25 }
  0x4d   : > { %p398_p10 = pneg %p397_p13  ;;  %p403_p2 = scmp.lt.s32.totalorder %s401_s26, %s395_s23 }
  0x4f   : > { %p404_p0 = por %p403_p2, %p402_p1 }
  0x51   : > { %p405_p3 = pnand %p404_p0, %p398_p10 }
  0x53   : > { %408 = shalt.err (!%p405_p3)
}
  0x54   : > { %s409_s13 = scalar_lea.hbm %s188_s15, 128  ;;  %s413_s3 = scalar_lea.hbm %s651_s2, 256 }
  0x55   : > { %p410_p12 = scmp.ne.s32.totalorder %s188_s15, %s409_s13  ;;  %p414_p6 = scmp.lt.s32.totalorder %s188_s15, %s651_s2 }
  0x56   : > { %p415_p4 = scmp.lt.s32.totalorder %s413_s3, %s409_s13 }
  0x57   : > { %p411_p5 = pnand %p410_p12, %p668_p11 }
  0x58   : > { %p416_p8 = por %p415_p4, %p414_p6 }
  0x59   : > { %p412_p7 = pneg %p411_p5 }
  0x5b   : > { %p417_p9 = pnand %p416_p8, %p412_p7 }
  0x5d   : > { %420 = shalt.err (!%p417_p9)
}
  0x5e   : > { %290 = dma.vmem_to_hbm [thread:$0]  (%p668_p11), %s191_s7, 128, %s188_s15, %s177_s22  }
  0x5f PF: > { %s202_s6 = sand.u32 1, %s451_s9   ;;  %p669_p13 = scmp.ne.s32.totalorder %s657_s16, 0 }
  0x60   : > { %p670_p10 = scmp.ge.s32.totalorder %s463_s12, 2  ;;  %s203_s8 = scalar_lea.sflag [#allocation4], %s202_s6 }
  0x62   : > { %p301_p1 = pnand %p670_p10, %p669_p13 }
  0x64   : > { %p302_p2 = pneg %p301_p1 }
  0x66   : > { %446 = dma.done.wait (%p302_p2), %s203_s8, 128  }
  0x67   : > { %448 = vsyncadd (%p302_p2), %s203_s8, 4294967168  ;;  %p16_p0 = scmp.ge.s32.totalorder %s531_s20, 4   ;;  %s671_s9 = smov %s455_s10 }
  0x68   : > { %s672_s10 = smov %s459_s11  ;;  %s673_s11 = smov %s558_s28 }
  0x69   : > { %s674_s12 = smov %s531_s20  ;;  %18 = sbr.rel (!%p16_p0) target bundleno = 6 (0x6), region = 77 }
  0x6e   :  { %208 = vsyncpa [#allocation3], 1 }
  0x6f   :  { %210 = vsyncpa [#allocation3 + $0x1], 1 }
  0x70   :  { %211 = vsyncpa [#allocation6], 1 }
  0x71   :  { %212 = vsyncpa [#allocation4], 1 }
  0x72   :  { %214 = vsyncpa [#allocation4 + $0x1], 1 }

// kernel: tpu_custom_call.1
= control target key start
LH: loop header
LB: loop body
LE: loop exit
PB: predicated region body
PF: predicated region fallthrough
CT: control target
= control target key end

     0   :  { %11 = vsyncpa [#allocation3], 0  ;;  %s1220_s0 = inlined_call_operand.vmem [shape: f32[16,32], index: 0, kind: input, shape index: {}]   ;;  %s1221_s1 = inlined_call_operand.vmem [shape: f32[96,32], index: 1, kind: input, shape index: {}]   ;;  %s1222_s2 = inlined_call_operand.vmem [shape: f32[3,1,32], index: 2, kind: input, shape index: {}]   ;;  %s1223_s3 = inlined_call_operand.hbm [shape: f32[16,32], index: 3, kind: output, shape index: {0}]   ;;  %s1224_s4 = inlined_call_operand.hbm [shape: f32[16,32], index: 4, kind: output, shape index: {1}]   ;;  %s1225_s5 = inlined_call_operand.hbm [shape: f32[16,32], index: 5, kind: output, shape index: {2}]  }
   0x1   :  { %13 = vsyncpa [#allocation3 + $0x1], 0 }
   0x2   :  { %14 = vsyncpa [#allocation5], 0 }
   0x3   :  { %16 = vsyncpa [#allocation5 + $0x1], 0  ;;  %s986_s18 = smov 0   ;;  %s988_s19 = smov 0  }
   0x4   :  { %s990_s20 = smov 0   ;;  %s992_s21 = smov 0  }
   0x5 LB: > { %s1007_s22 = sadd.s32 4294967295, %s949_s21   ;;  %s1226_s23 = sadd.s32 4294967294, %s949_s21   ;;  %s949_s21 = sphi %s992_s21, %s1235_s21   ;;  %s945_s20 = sphi %s990_s20, %s1234_s20   ;;  %s941_s19 = sphi %s988_s19, %s1233_s19   ;;  %s937_s18 = sphi %s986_s18, %s1232_s18  }
   0x6   : > { %s1011_s24 = sadd.s32 1, %s949_s21   ;;  %s97_s25 = sadd.s32 1, %s945_s20 }
   0x7   : > { %s94_s26 = ssub.s32 %s949_s21, %s1011_s24  ;;  %p107_p0 = scmp.ne.s32.totalorder %s945_s20, %s941_s19 }
   0x8   : > { %p95_p1 = scmp.eq.s32.totalorder %s94_s26, 0  ;;  %p108_p2 = scmp.eq.s32.totalorder %s1007_s22, 1 }
   0x9   : > { %p113_p3 = scmp.ne.s32.totalorder %s941_s19, %s937_s18  ;;  %p114_p4 = scmp.eq.s32.totalorder %s1226_s23, 1 }
   0xa   : > { %s1024_s27 = scalar_select %p95_p1, %s945_s20, %s97_s25  }
   0xb   : > { %p1026_p5 = por %p108_p2, %p107_p0  ;;  %p1030_p6 = por %p114_p4, %p113_p3 }
   0xc   : > { %p701_p7 = scmp.ge.s32.totalorder %s949_s21, 1  ;;  %p197_p8 = scmp.lt.s32.totalorder %s949_s21, 3 }
   0xe   : > { %p198_p9 = pnand %p701_p7, %p197_p8 }
   0xf   : > { %p234_p10 = scmp.lt.s32.totalorder (!%p198_p9), %s1007_s22, 1  ;;  %s1227_s26 = sand.u32 (!%p198_p9), 1, %s941_s19  }
  0x10   : > { %201 = sbr.rel (%p198_p9) target bundleno = 292 (0x124), region = 32  ;;  %s1098_s30 = sshll.u32 (!%p198_p9), %s1227_s26, 3 }
  0x11   : > { %s533_s6 = sand.u32 (!%p198_p9), 1, %s1007_s22   ;;  %s1108_s11 = sshll.u32 (!%p198_p9), %s1007_s22, 7 }
  0x12   : > { %s226_s12 = scalar_lea.vmem (!%p198_p9), [#allocation4], %s1098_s30  ;;  %s219_s14 = scalar_lea.vmem (!%p198_p9), [#allocation2], %s1098_s30 }
  0x13   : > { %s552_s15 = sshll.u32 (!%p198_p9), %s219_s14, 4  ;;  %s1131_s9 = scalar_lea.sflag (!%p198_p9), [#allocation5], %s533_s6  ;;  %s1129_s15 = int_to_ptr.vmem [resolvable:$true] %s552_s15 }
  0x14   : > { %s953_s16 = smov (!%p198_p9), [#allocation4]  }
  0x15   : > { %v242_v0 = vld [vmem:[%s1221_s1 + $0x18] sm:$0xff]  ;;  %vm258_vm0 = vcmask 261120   ;;  %v951_v1 = vmov 0.0   ;;  %v241_v3 = vld [vmem:[%s1221_s1 + $0x10] sm:$0xff]  ;;  %vm952_vm1 = vmmov 0   ;;  %s235_s13 = scalar_select %p234_p10, %s1007_s22, 1 }
  0x16   : > { %749 = vmatprep.subr.mxu0 %v951_v1  ;;  %760 = vmatprep.subr.mxu1 %v951_v1  ;;  %v246_v2 = vld [vmem:[%s1221_s1 + $0x38] sm:$0xff]  ;;  %v245_v4 = vld [vmem:[%s1221_s1 + $0x30] sm:$0xff]  ;;  %v240_v5 = vld [vmem:[%s1221_s1 + $0x8] sm:$0xff]  ;;  %s837_s17 = sshll.u32 %s953_s16, 4  ;;  %s838_s17 = int_to_ptr.vmem [resolvable:$false] %s837_s17 }
  0x17   : > { %750 = vmatpush3.xpose.msk.msra.mxu0 %vm258_vm0, %v242_v0  ;;  %761 = vmatpush3.xpose.msk.msra.mxu1 %vm258_vm0, %v246_v2  ;;  %v244_v6 = vld [vmem:[%s1221_s1 + $0x28] sm:$0xff]  ;;  %s705_s25 = sshll.u32 %s235_s13, 3  ;;  %v239_v7 = vld [vmem:[%s1221_s1] sm:$0xff]  ;;  %v250_v10 = vld [vmem:[%s1221_s1 + $0x58] sm:$0xff]  ;;  %s565_s13 = sshll.u32 %s226_s12, 4  ;;  %s1120_s13 = int_to_ptr.vmem [resolvable:$true] %s565_s13 }
  0x18   : > { %751 = vmatprep.subr.mxu0 %v951_v1  ;;  %757 = vmatprep.mubr.msk.f32.mxu0 %vm952_vm1, %v951_v1  ;;  %s237_s8 = scalar_lea.vmem %s1220_s0, %s705_s25  ;;  %v243_v8 = vld [vmem:[%s1221_s1 + $0x20] sm:$0xff]  ;;  %v249_v11 = vld [vmem:[%s1221_s1 + $0x50] sm:$0xff]  ;;  %v248_v12 = vld [vmem:[%s1221_s1 + $0x48] sm:$0xff]  ;;  %s1118_s25 = scalar_lea.hbm %s1224_s4, %s1108_s11 }
  0x19   : > { %762 = vmatprep.subr.mxu1 %v951_v1  ;;  %768 = vmatprep.mubr.msk.f32.mxu1 %vm952_vm1, %v951_v1  ;;  %v238_v9 = vld [vmem:[%s237_s8] sm:$0xff]  ;;  %s1127_s8 = scalar_lea.hbm %s1223_s3, %s1108_s11  ;;  %s833_s10 = scalar_lea.vmem %s1120_s13, 128 }
  0x1a   : > { %v247_v13 = vld [vmem:[%s1221_s1 + $0x40] sm:$0xff]  ;;  %p834_p11 = scmp.ne.s32.totalorder %s1120_s13, %s833_s10  ;;  %s839_s23 = scalar_lea.vmem %s838_s17, 256 }
  0x1b   : > { %752 = vmatpush3.xpose.msk.msra.mxu0 %vm258_vm0, %v241_v3  ;;  %763 = vmatpush3.xpose.msk.msra.mxu1 %vm258_vm0, %v245_v4  ;;  %v706_v14 = vld [vmem:[%s1222_s2] ss:$0 sm:$0xff]  ;;  %v713_v15 = vld [vmem:[%s1222_s2 + $0x1] ss:$0 sm:$0xff]  ;;  %p840_p0 = scmp.lt.s32.totalorder %s1120_s13, %s838_s17  ;;  %p841_p1 = scmp.lt.s32.totalorder %s839_s23, %s833_s10 }
  0x1c   : > { %753 = vmatprep.subr.mxu0 %v951_v1  ;;  %764 = vmatprep.subr.mxu1 %v951_v1  ;;  %p835_p12 = pnand %p834_p11, %p1026_p5 }
  0x1d   : > { %p842_p2 = por %p841_p1, %p840_p0 }
  0x1e   : > { %p836_p13 = pneg %p835_p12 }
  0x1f   : > { %754 = vmatpush3.xpose.msk.msra.mxu0 %vm258_vm0, %v240_v5  ;;  %765 = vmatpush3.xpose.msk.msra.mxu1 %vm258_vm0, %v244_v6 }
  0x20   : > { %755 = vmatprep.subr.mxu0 %v951_v1  ;;  %766 = vmatprep.subr.mxu1 %v951_v1  ;;  %p843_p3 = pnand %p842_p2, %p836_p13 }
  0x23   : > { %756 = vmatpush3.xpose.msk.msra.mxu0 %vm258_vm0, %v239_v7  ;;  %767 = vmatpush3.xpose.msk.msra.mxu1 %vm258_vm0, %v243_v8 }
  0x24   : > { %771 = vmatprep.subr.mxu0 %v951_v1 }
  0x26   : > { %758 = vmatmul.mubr.msk.f32.vlgmr.msra.gmra.mxu0 %vm258_vm0, %v238_v9  ;;  %769 = vmatmul.mubr.msk.f32.vlgmr.msra.gmra.mxu1 %vm258_vm0, %v238_v9 }
  0x27   : > { %772 = vmatpush3.xpose.msk.msra.mxu0 %vm258_vm0, %v250_v10  ;;  %779 = vmatprep.mubr.msk.f32.mxu0 %vm952_vm1, %v951_v1 }
  0x28   : > { %773 = vmatprep.subr.mxu0 %v951_v1 }
  0x2b   : > { %774 = vmatpush3.xpose.msk.msra.mxu0 %vm258_vm0, %v249_v11 }
  0x2c   : > { %775 = vmatprep.subr.mxu0 %v951_v1 }
  0x2f   : > { %776 = vmatpush3.xpose.msk.msra.mxu0 %vm258_vm0, %v248_v12 }
  0x30   : > { %777 = vmatprep.subr.mxu0 %v951_v1 }
  0x33   : > { %778 = vmatpush3.xpose.msk.msra.mxu0 %vm258_vm0, %v247_v13 }
  0x36   : > { %780 = vmatmul.mubr.msk.f32.vlgmr.msra.gmra.mxu0 %vm258_vm0, %v238_v9 }
  0xe6   : > { %v340_v16 = vpop.f32.mrf.mxu0  ;;  %v432_v17 = vpop.f32.mrf.mxu1 }
  0xe7   : > { %v341_v18 = vadd.f32 %v706_v14, %v340_v16  ;;  %v433_v19 = vadd.f32 %v713_v15, %v432_v17 }
  0xe8   : > { %v759_v20 = vpop.f32.mrf.mxu0  ;;  %v770_v21 = vpop.f32.mrf.mxu1 }
  0xe9   : > { %v344_v22 = vmul.f32 0.5, %v341_v18  ;;  %436 = vst.msk [vmem:[%s226_s12] sm:$0xff] %vm258_vm0, %v433_v19 }
  0xea   : > { %846 = shalt.err (!%p843_p3)
}
  0xeb   : > { %s847_s6 = scalar_lea.hbm %s1118_s25, 128  ;;  %s851_s7 = scalar_lea.hbm %s1224_s4, 256 }
  0xec   : > { %p848_p4 = scmp.ne.s32.totalorder %s1118_s25, %s847_s6  ;;  %p852_p9 = scmp.lt.s32.totalorder %s1118_s25, %s1224_s4 }
  0xed   : > { %p853_p10 = scmp.lt.s32.totalorder %s851_s7, %s847_s6 }
  0xee   : > { %p849_p7 = pnand %p848_p4, %p1026_p5 }
  0xef   : > { %p854_p11 = por %p853_p10, %p852_p9 }
  0xf0   : > { %p850_p8 = pneg %p849_p7 }
  0xf2   : > { %p855_p12 = pnand %p854_p11, %p850_p8 }
  0xf4   : > { %858 = shalt.err (!%p855_p12)
}
  0xf5   : > { %783 = dma.vmem_to_hbm [thread:$0]  (%p1026_p5), %s1120_s13, 128, %s1118_s25, %s1131_s9   ;;  %345 = vst.msk [vmem:[%s219_s14] sm:$0xff] %vm258_vm0, %v344_v22 }
  0xf6   : > { %s1230_s23 = sand.u32 1, %s941_s19   ;;  %s859_s10 = scalar_lea.vmem %s1129_s15, 128 }
  0xf7   : > { %s529_s26 = scalar_lea.sflag [#allocation3], %s1230_s23  ;;  %p860_p13 = scmp.ne.s32.totalorder %s1129_s15, %s859_s10 }
  0xf8   : > { %s954_s17 = smov [#allocation2]  }
  0xf9   : > { %p861_p0 = pnand %p860_p13, %p1026_p5  ;;  %s863_s6 = sshll.u32 %s954_s17, 4  ;;  %s864_s6 = int_to_ptr.vmem [resolvable:$false] %s863_s6 }
  0xfa   : > { %s865_s12 = scalar_lea.vmem %s864_s6, 256  ;;  %p866_p2 = scmp.lt.s32.totalorder %s1129_s15, %s864_s6 }
  0xfb   : > { %p862_p1 = pneg %p861_p0  ;;  %p867_p3 = scmp.lt.s32.totalorder %s865_s12, %s859_s10 }
  0xfd   : > { %p868_p4 = por %p867_p3, %p866_p2 }
  0xff   : > { %p869_p7 = pnand %p868_p4, %p862_p1 }
 0x101   : > { %872 = shalt.err (!%p869_p7)
}
 0x102   : > { %s873_s13 = scalar_lea.hbm %s1127_s8, 128  ;;  %s877_s22 = scalar_lea.hbm %s1223_s3, 256 }
 0x103   : > { %p874_p8 = scmp.ne.s32.totalorder %s1127_s8, %s873_s13  ;;  %p878_p11 = scmp.lt.s32.totalorder %s1127_s8, %s1223_s3 }
 0x104   : > { %p879_p12 = scmp.lt.s32.totalorder %s877_s22, %s873_s13 }
 0x105   : > { %p875_p9 = pnand %p874_p8, %p1026_p5 }
 0x106   : > { %p880_p13 = por %p879_p12, %p878_p11 }
 0x107   : > { %p876_p10 = pneg %p875_p9 }
 0x109   : > { %p881_p0 = pnand %p880_p13, %p876_p10 }
 0x10b   : > { %884 = shalt.err (!%p881_p0)
}
 0x10c   : > { %782 = dma.vmem_to_hbm [thread:$0]  (%p1026_p5), %s1129_s15, 128, %s1127_s8, %s529_s26   ;;  %v720_v23 = vld [vmem:[%s1222_s2 + $0x2] ss:$0 sm:$0xff]  ;;  %v523_v24 = vpop.f32.mrf.mxu0 }
 0x10d   : > { %s233_s17 = scalar_lea.vmem [#allocation6], %s1098_s30  ;;  %v524_v25 = vadd.f32 %v720_v23, %v523_v24  ;;  %s576_s14 = scalar_lea.hbm %s1225_s5, %s1108_s11 }
 0x10e   : > { %s578_s6 = sshll.u32 %s233_s17, 4  ;;  %v781_v26 = vpop.f32.mrf.mxu0  ;;  %s955_s15 = smov [#allocation6]   ;;  %s579_s6 = int_to_ptr.vmem [resolvable:$true] %s578_s6 }
 0x10f   : > { %527 = vst.msk [vmem:[%s233_s17] sm:$0xff] %vm258_vm0, %v524_v25  ;;  %s885_s25 = scalar_lea.vmem %s579_s6, 128  ;;  %s889_s8 = sshll.u32 %s955_s15, 4  ;;  %s890_s8 = int_to_ptr.vmem [resolvable:$false] %s889_s8 }
 0x110   : > { %p886_p1 = scmp.ne.s32.totalorder %s579_s6, %s885_s25  ;;  %s891_s30 = scalar_lea.vmem %s890_s8, 256 }
 0x111   : > { %p892_p4 = scmp.lt.s32.totalorder %s579_s6, %s890_s8  ;;  %p893_p7 = scmp.lt.s32.totalorder %s891_s30, %s885_s25 }
 0x112   : > { %p887_p2 = pnand %p886_p1, %p1026_p5 }
 0x113   : > { %p894_p8 = por %p893_p7, %p892_p4 }
 0x114   : > { %p888_p3 = pneg %p887_p2 }
 0x116   : > { %p895_p9 = pnand %p894_p8, %p888_p3 }
 0x118   : > { %898 = shalt.err (!%p895_p9)
}
 0x119   : > { %s899_s26 = scalar_lea.hbm %s576_s14, 128  ;;  %s903_s7 = scalar_lea.hbm %s1225_s5, 256 }
 0x11a   : > { %p900_p10 = scmp.ne.s32.totalorder %s576_s14, %s899_s26  ;;  %p904_p13 = scmp.lt.s32.totalorder %s576_s14, %s1225_s5 }
 0x11b   : > { %p905_p0 = scmp.lt.s32.totalorder %s903_s7, %s899_s26 }
 0x11c   : > { %p901_p11 = pnand %p900_p10, %p1026_p5 }
 0x11d   : > { %p906_p1 = por %p905_p0, %p904_p13 }
 0x11e   : > { %p902_p12 = pneg %p901_p11 }
 0x120   : > { %p907_p2 = pnand %p906_p1, %p902_p12 }
 0x122   : > { %910 = shalt.err (!%p907_p2)
}
 0x123   : > { %784 = dma.vmem_to_hbm [thread:$0]  (%p1026_p5), %s579_s6, 128, %s576_s14, %s1131_s9  }
 0x124 PF: > { %p798_p3 = scmp.ge.s32.totalorder %s949_s21, 2  ;;  %s590_s10 = sand.u32 1, %s937_s18  }
 0x125   : > { %s591_s17 = scalar_lea.sflag [#allocation3], %s590_s10 }
 0x126   : > { %p789_p4 = pnand %p798_p3, %p1030_p6 }
 0x128   : > { %p790_p7 = pneg %p789_p4 }
 0x12a   : > { %928 = dma.done.wait (%p790_p7), %s591_s17, 128  }
 0x12b   : > { %930 = vsyncadd (%p790_p7), %s591_s17, 4294967168  ;;  %s1231_s12 = sadd.s32 4294967294, %s949_s21  }
 0x12c   : > { %s599_s13 = sand.u32 1, %s1231_s12  }
 0x12d   : > { %s600_s25 = scalar_lea.sflag [#allocation5], %s599_s13 }
 0x12e   : > { %932 = dma.done.wait (%p790_p7), %s600_s25, 256  }
 0x12f   : > { %934 = vsyncadd (%p790_p7), %s600_s25, 4294967040  ;;  %p19_p5 = scmp.ge.s32.totalorder %s1011_s24, 4   ;;  %s1232_s18 = smov %s941_s19 }
 0x130   : > { %s1233_s19 = smov %s945_s20  ;;  %s1234_s20 = smov %s1024_s27 }
 0x131   : > { %s1235_s21 = smov %s1011_s24  ;;  %21 = sbr.rel (!%p19_p5) target bundleno = 5 (0x5), region = 101 }
 0x136   :  { %614 = vsyncpa [#allocation3], 1 }
 0x137   :  { %616 = vsyncpa [#allocation3 + $0x1], 1 }
 0x138   :  { %617 = vsyncpa [#allocation5], 1 }
 0x139   :  { %619 = vsyncpa [#allocation5 + $0x1], 1 }

</bundles_post_ra>
